<compile_context>
chip_gen: v7x
topology: tpu7x:2x2x1
jax: 0.10.0
libtpu: 0.0.40
codegen_flags: <defaults>
</compile_context>

<pallas_src>
import jax
import jax.numpy as jnp
from jax.experimental import pallas as pl
from jax.experimental.pallas import tpu as pltpu


def dam_kernel(alpha_ref, beta_ref, mu_ref, x_ref, o_ref):
    # alpha_ref, beta_ref: SMEM (1,) scalars
    # mu_ref: VMEM (1, tile_d)
    # x_ref, o_ref: VMEM (tile_b, tile_d)
    a = alpha_ref[0]
    b = beta_ref[0]
    # Mask math stays in f32; tanh goes to the EUP slot (free filler under mem stalls).
    mask = jnp.maximum(jnp.tanh((a * a) * (mu_ref[...] + b)), 0.0)  # (1, tile_d)
    o_ref[...] = (x_ref[...] * mask).astype(o_ref.dtype)  # broadcast over sublane axis


def _round_up(x, m):
    return (x + m - 1) // m * m


def dam_forward(x, mu, alpha, beta, *, max_tile_bytes=2 * 1024 * 1024):
    """x: (B, in_dim); mu: (in_dim,); alpha, beta: (1,). Returns x * mask."""
    B, D = x.shape
    itemsize = jnp.dtype(x.dtype).itemsize

    # --- choose lane (in_dim) tile: multiple of 128, capped at 2048 ---
    Dp = _round_up(D, 128)
    tile_d = min(Dp, 2048)
    Dp = _round_up(Dp, tile_d)

    # --- choose sublane (batch) tile: as big as fits the per-tile byte budget ---
    rows = max(8, (max_tile_bytes // (tile_d * itemsize)) // 8 * 8)
    tile_b = min(rows, _round_up(B, 8))
    Bp = _round_up(B, tile_b)

    # --- pad inputs (zeros; padded region contributes 0 and is sliced off) ---
    xp = x
    if (Bp, Dp) != (B, D):
        xp = jnp.pad(x, ((0, Bp - B), (0, Dp - D)))
    mu2d = mu.reshape(1, D)
    if Dp != D:
        mu2d = jnp.pad(mu2d, ((0, 0), (0, Dp - D)))

    grid = (Bp // tile_b, Dp // tile_d)

    cost = pl.CostEstimate(
        flops=2 * Bp * Dp,
        transcendentals=Dp * grid[0],
        bytes_accessed=2 * Bp * Dp * itemsize + Dp * 4,
    )

    out = pl.pallas_call(
        dam_kernel,
        out_shape=jax.ShapeDtypeStruct((Bp, Dp), x.dtype),
        grid_spec=pl.GridSpec(
            grid=grid,
            in_specs=[
                pl.BlockSpec(memory_space=pltpu.SMEM),                 # alpha
                pl.BlockSpec(memory_space=pltpu.SMEM),                 # beta
                pl.BlockSpec((1, tile_d), lambda i, j: (0, j)),        # mu row tile
                pl.BlockSpec((tile_b, tile_d), lambda i, j: (i, j)),   # x tile
            ],
            out_specs=pl.BlockSpec((tile_b, tile_d), lambda i, j: (i, j)),
        ),
        compiler_params=pltpu.CompilerParams(
            dimension_semantics=("parallel", "parallel"),
        ),
        cost_estimate=cost,
    )(alpha, beta, mu2d, xp)

    if (Bp, Dp) != (B, D):
        out = out[:B, :D]
    return out


def dam_reference(x, mu, alpha, beta):
    mask = jnp.maximum(jnp.tanh((alpha ** 2) * (mu + beta)), 0.0)
    return x * mask


if __name__ == "__main__":
    key = jax.random.PRNGKey(0)

    # Deterministic parameter init (mirrors DAM.__init__).
    def make_params(in_dim):
        mu = jnp.arange(in_dim, dtype=jnp.float32) / in_dim * 5.0  # fixed
        beta = jnp.ones((1,), dtype=jnp.float32)                   # trainable in torch
        alpha = jnp.ones((1,), dtype=jnp.float32)                  # fixed
        return mu, alpha, beta

    # Small, lane-aligned shape.
    B, in_dim = 16, 128
    mu, alpha, beta = make_params(in_dim)
    k1, k2 = jax.random.split(key)
    x = jax.random.normal(k1, (B, in_dim), dtype=jnp.float32)
    y = jax.block_until_ready(dam_forward(x, mu, alpha, beta))
    y_ref = dam_reference(x, mu, alpha, beta)
    assert jnp.allclose(y, y_ref, atol=1e-6, rtol=1e-6), "mismatch vs reference (aligned)"

    # Small, non-aligned shape (exercises the padding path).
    B2, in_dim2 = 10, 96
    mu2, alpha2, beta2 = make_params(in_dim2)
    x2 = jax.random.normal(k2, (B2, in_dim2), dtype=jnp.float32)
    y2 = jax.block_until_ready(dam_forward(x2, mu2, alpha2, beta2))
    y2_ref = dam_reference(x2, mu2, alpha2, beta2)
    assert jnp.allclose(y2, y2_ref, atol=1e-6, rtol=1e-6), "mismatch vs reference (padded)"

    print("KERNEL_OK")
</pallas_src>

<mosaic_0001>
module attributes {stable_mosaic.version = 11 : i64} {
  func.func @dam_kernel(%arg0: i32, %arg1: i32, %arg2: memref<1xf32, #tpu.memory_space<smem>>, %arg3: memref<1xf32, #tpu.memory_space<smem>>, %arg4: memref<1x128xf32, #tpu.memory_space<vmem>>, %arg5: memref<16x128xf32, #tpu.memory_space<vmem>>, %arg6: memref<16x128xf32, #tpu.memory_space<vmem>>) attributes {dimension_semantics = [#tpu.dimension_semantics<parallel>, #tpu.dimension_semantics<parallel>], iteration_bounds = array<i64: 1, 1>, scalar_prefetch = 0 : i64, scratch_operands = 0 : i64, tpu.core_type = #tpu.core_type<tc>, window_params = [{transform_indices = @transform_0, window_bounds = array<i64: 1>}, {transform_indices = @transform_1, window_bounds = array<i64: 1>}, {transform_indices = @transform_2, window_bounds = array<i64: 1, 128>}, {transform_indices = @transform_3, window_bounds = array<i64: 16, 128>}, {transform_indices = @transform_4, window_bounds = array<i64: 16, 128>}]} {
    %c0 = arith.constant 0 : index
    %0 = memref.load %arg2[%c0] : memref<1xf32, #tpu.memory_space<smem>>
    %c0_0 = arith.constant 0 : index
    %1 = memref.load %arg3[%c0_0] : memref<1xf32, #tpu.memory_space<smem>>
    %2 = arith.mulf %0, %0 : f32
    %c0_1 = arith.constant 0 : index
    %c0_2 = arith.constant 0 : index
    %3 = vector.load %arg4[%c0_1, %c0_2] : memref<1x128xf32, #tpu.memory_space<vmem>>, vector<1x128xf32>
    %4 = vector.broadcast %1 : f32 to vector<1x128xf32>
    %5 = arith.addf %3, %4 : vector<1x128xf32>
    %6 = vector.broadcast %2 : f32 to vector<1x128xf32>
    %7 = arith.mulf %6, %5 : vector<1x128xf32>
    %8 = math.tanh %7 : vector<1x128xf32>
    %cst = arith.constant 0.000000e+00 : f32
    %9 = vector.broadcast %cst : f32 to vector<1x128xf32>
    %10 = arith.maximumf %8, %9 : vector<1x128xf32>
    %c0_3 = arith.constant 0 : index
    %c0_4 = arith.constant 0 : index
    %11 = vector.load %arg5[%c0_3, %c0_4] : memref<16x128xf32, #tpu.memory_space<vmem>>, vector<16x128xf32>
    %12 = vector.broadcast %10 : vector<1x128xf32> to vector<16x128xf32>
    %13 = arith.mulf %11, %12 : vector<16x128xf32>
    %c0_5 = arith.constant 0 : index
    %c0_6 = arith.constant 0 : index
    %14 = vector.load %arg6[%c0_5, %c0_6] : memref<16x128xf32, #tpu.memory_space<vmem>>, vector<16x128xf32>
    tpu.vector_store %arg6[%c0_5, %c0_6], %13 {strides = array<i32>} : memref<16x128xf32, #tpu.memory_space<vmem>>, vector<16x128xf32>,
    return
  }
  func.func @transform_0(%arg0: i32, %arg1: i32) -> i32 {
    %c0_i32 = arith.constant 0 : i32
    %c0_i32_0 = arith.constant 0 : i32
    return %c0_i32 : i32
  }
  func.func @transform_1(%arg0: i32, %arg1: i32) -> i32 {
    %c0_i32 = arith.constant 0 : i32
    %c0_i32_0 = arith.constant 0 : i32
    return %c0_i32 : i32
  }
  func.func @transform_2(%arg0: i32, %arg1: i32) -> (i32, i32) {
    %c0_i32 = arith.constant 0 : i32
    %c0_i32_0 = arith.constant 0 : i32
    return %c0_i32, %arg1 : i32, i32
  }
  func.func @transform_3(%arg0: i32, %arg1: i32) -> (i32, i32) {
    %c0_i32 = arith.constant 0 : i32
    return %arg0, %arg1 : i32, i32
  }
  func.func @transform_4(%arg0: i32, %arg1: i32) -> (i32, i32) {
    %c0_i32 = arith.constant 0 : i32
    return %arg0, %arg1 : i32, i32
  }
}

</mosaic_0001>

<bundles_post_ra>
// kernel: tpu_custom_call.1
= control target key start
LH: loop header
LB: loop body
LE: loop exit
PB: predicated region body
PF: predicated region fallthrough
CT: control target
= control target key end

     0   :  { %11 = vsyncpa [#allocation5], 0  ;;  %s196_s0 = inlined_call_operand.<no memory space> [shape: f32[1], index: 0, kind: input, shape index: {}]   ;;  %s197_s1 = inlined_call_operand.<no memory space> [shape: f32[1], index: 1, kind: input, shape index: {}]   ;;  %s198_s2 = inlined_call_operand.vmem [shape: f32[1,128], index: 2, kind: input, shape index: {}]   ;;  %s199_s3 = inlined_call_operand.hbm [shape: f32[16,128], index: 3, kind: input, shape index: {}]   ;;  %s200_s4 = inlined_call_operand.hbm [shape: f32[16,128], index: 4, kind: output, shape index: {}]  }
   0x1   :  { %12 = vsyncpa [#allocation6], 0  ;;  %s127_s15 = smov [#allocation4]   ;;  %s79_s19 = scalar_lea.hbm %s199_s3, 256 }
   0x2   :  { %s24_s16 = sshll.u32 %s127_s15, 4  ;;  %p80_p0 = scmp.ne.s32.totalorder %s199_s3, %s79_s19  ;;  %s25_s16 = int_to_ptr.vmem [resolvable:$true] %s24_s16 }
   0x3   :  { %p83_p1 = scmp.lt.u32.totalorder %s79_s19, %s199_s3 }
   0x5   :  { %p85_p2 = pnand %p83_p1, %p80_p0 }
   0x7   :  { %88 = shalt.err (!%p85_p2)
}
   0x8   :  { %s89_s24 = scalar_lea.vmem %s25_s16, 256  ;;  %p94_p4 = scmp.lt.s32.totalorder %s25_s16, %s25_s16 }
   0x9   :  { %p90_p3 = scmp.ne.s32.totalorder %s25_s16, %s89_s24  ;;  %p95_p5 = scmp.lt.s32.totalorder %s89_s24, %s89_s24 }
   0xb   :  { %p96_p6 = por %p95_p5, %p94_p4 }
   0xd   :  { %p97_p7 = pnand %p96_p6, %p90_p3 }
   0xf   :  { %100 = shalt.err (!%p97_p7)
}
  0x10   :  { %s128_s25 = smov 128   ;;  %s129_s26 = smov 8  }
  0x11   :  { %30 = dma.hbm_to_vmem [thread:$0]  %s199_s3, 256, %s25_s16, [#allocation5], %s128_s25, %s128_s25, %s129_s26  }
  0x12   :  { %123 = dma.done.wait [#allocation5], 256  }
  0x13   :  { %124 = vsyncadd [#allocation5], 4294967040  ;;  %s36_s5 = smul.f32 %s196_s0, %s196_s0  ;;  %v38_v0 = vstv %s197_s1  ;;  %v37_v1 = vld [vmem:[%s198_s2] sm:$0x1]  ;;  %v47_v5 = vlaneseq  ;;  %v45_v11 = vld [vmem:[#allocation4 + $0x8] sm:$0xff]  ;;  %s130_s0 = smov [#allocation7]  }
  0x14   :  { %v39_v3 = vadd.f32 %v38_v0, %v37_v1  ;;  %v44_v10 = vld [vmem:[#allocation4] sm:$0xff]  ;;  %s61_s3 = sshll.u32 %s130_s0, 4  ;;  %s62_s3 = int_to_ptr.vmem [resolvable:$true] %s61_s3 }
  0x15   :  { %v40_v2 = vstv %s36_s5  ;;  %v48_v6 = vshrl.u32 %v47_v5, 7  ;;  %s101_s1 = scalar_lea.vmem %s62_s3, 256  ;;  %p106_p9 = scmp.lt.s32.totalorder %s62_s3, %s62_s3 }
  0x16   :  { %v41_v4 = vmul.f32 %v40_v2, %v39_v3  ;;  %p102_p8 = scmp.ne.s32.totalorder %s62_s3, %s101_s1  ;;  %p107_p10 = scmp.lt.s32.totalorder %s101_s1, %s101_s1 }
  0x17   :  { %v49_v7 = vsub.s32 0, %v48_v6 }
  0x18   :  { %77 = vtanh.f32 %v41_v4  ;;  %p108_p11 = por %p107_p10, %p106_p9 }
  0x1a   :  { %p109_p12 = pnand %p108_p11, %p102_p8 }
  0x22   :  { %v78_v8 = vpop.eup %77 }
  0x23   :  { %v43_v9 = vmax.f32 %v78_v8, 0.0 }
  0x25   :  { %v50_v12 = vrot.slane %v43_v9, %v49_v7 }
  0x27   :  { %v52_v13 = vmul.f32 %v50_v12, %v44_v10  ;;  %v53_v14 = vmul.f32 %v50_v12, %v45_v11 }
  0x29   :  { %54 = vst [vmem:[#allocation7] sm:$0xff] %v52_v13  ;;  %55 = vst [vmem:[#allocation7 + $0x8] sm:$0xff] %v53_v14 }
  0x2a   :  { %112 = shalt.err (!%p109_p12)
}
  0x2b   :  { %s113_s11 = scalar_lea.hbm %s200_s4, 256 }
  0x2c   :  { %p114_p13 = scmp.ne.s32.totalorder %s200_s4, %s113_s11  ;;  %p117_p0 = scmp.lt.u32.totalorder %s113_s11, %s200_s4 }
  0x2e   :  { %p119_p1 = pnand %p117_p0, %p114_p13 }
  0x30   :  { %122 = shalt.err (!%p119_p1)
}
  0x31   :  { %67 = dma.vmem_to_hbm [thread:$0]  %s62_s3, 256, %s200_s4, [#allocation6], %s128_s25, %s128_s25, %s129_s26  }
  0x32   :  { %125 = dma.done.wait [#allocation6], 256  }
  0x33   :  { %126 = vsyncadd [#allocation6], 4294967040 }
  0x34   :  { %71 = vsyncpa [#allocation5], 1 }
  0x35   :  { %72 = vsyncpa [#allocation6], 1 }

</bundles_post_ra>
